<compile_context>
chip_gen: v7x
topology: tpu7x:2x2x1
jax: 0.10.0
libtpu: 0.0.40
codegen_flags: <defaults>
</compile_context>

<pallas_src>
import jax
import jax.numpy as jnp
from jax.experimental import pallas as pl
from jax.experimental.pallas import tpu as pltpu


def _round_up(x, m):
    return (x + m - 1) // m * m


def fm_kernel(dense_x_ref, w_ref, b_ref, lin_ref, embeds_ref, out_ref):
    # dense_out[b] = sum_d x[d, b] * w[d]   (bias added at the end)   -> (1, TB)
    x = dense_x_ref[...].astype(jnp.float32)            # (Dd, TB)
    w = w_ref[...]                                      # (Dd, 1), broadcast over lanes
    dense_out = jnp.sum(x * w, axis=0, keepdims=True)   # (1, TB)  VPU mul + sublane add

    # discrete_out[b] = sum_f emb1_f(x_f)                             -> (1, TB)
    discrete_out = jnp.sum(lin_ref[...].astype(jnp.float32), axis=0, keepdims=True)

    # FM second-order interaction                                     -> (1, TB)
    e = embeds_ref[...].astype(jnp.float32)             # (F, D, TB)
    sum_f = jnp.sum(e, axis=0)                          # (D, TB)   VPU adds over F
    square_of_sum = sum_f * sum_f                       # (D, TB)
    sum_of_square = jnp.sum(e * e, axis=0)              # (D, TB)
    second = 0.5 * jnp.sum(square_of_sum - sum_of_square, axis=0, keepdims=True)

    out_ref[...] = dense_out + discrete_out + second + b_ref[0, 0]


def fm_forward_pallas(dense_x_t, w_dense_T, b_dense, lin_t, embeds_t, *, block_b=512):
    """dense_x_t: (Dd, B), w_dense_T: (Dd, 1), b_dense: (1, 1),
    lin_t: (F, B), embeds_t: (F, D, B). Returns (B, 1) f32."""
    Dd, B = dense_x_t.shape
    F, D, _ = embeds_t.shape

    # Lane-dense batch tile: multiple of 128, capped at block_b (keeps each
    # double-buffered block small -> safe for v7x's 64 MiB VMEM too).
    TB = min(_round_up(block_b, 128), _round_up(B, 128))
    Bp = _round_up(B, TB)
    if Bp != B:
        pad = Bp - B
        dense_x_t = jnp.pad(dense_x_t, ((0, 0), (0, pad)))
        lin_t = jnp.pad(lin_t, ((0, 0), (0, pad)))
        embeds_t = jnp.pad(embeds_t, ((0, 0), (0, 0), (0, pad)))

    out_t = pl.pallas_call(
        fm_kernel,
        out_shape=jax.ShapeDtypeStruct((1, Bp), jnp.float32),
        grid=(Bp // TB,),
        in_specs=[
            pl.BlockSpec((Dd, TB), lambda i: (0, i)),        # dense_x_t
            pl.BlockSpec((Dd, 1), lambda i: (0, 0)),         # w (resident)
            pl.BlockSpec(memory_space=pltpu.MemorySpace.SMEM),  # bias scalar
            pl.BlockSpec((F, TB), lambda i: (0, i)),         # lin_t
            pl.BlockSpec((F, D, TB), lambda i: (0, 0, i)),   # embeds_t
        ],
        out_specs=pl.BlockSpec((1, TB), lambda i: (0, i)),
        compiler_params=pltpu.CompilerParams(
            dimension_semantics=("parallel",),
        ),
    )(dense_x_t, w_dense_T, b_dense, lin_t, embeds_t)

    return out_t[:, :B].T                                    # (B, 1)


def xavier_uniform(key, shape, fan_in, fan_out, dtype=jnp.float32):
    limit = (6.0 / (fan_in + fan_out)) ** 0.5
    return jax.random.uniform(key, shape, dtype, minval=-limit, maxval=limit)


def build_fm_params(key, feature_dims, dense_feature_dims, embed_dim,
                    interact_feature_nums, is_interact=False):
    embed_nums = feature_dims if is_interact else feature_dims[:-interact_feature_nums]
    keys = jax.random.split(key, 2 * len(embed_nums) + 2)
    k_iter = iter(keys)

    # nn.Linear(dense_feature_dims, 1): weight (1, Dd) xavier, bias default init
    w = xavier_uniform(next(k_iter), (1, dense_feature_dims), dense_feature_dims, 1)
    b = jax.random.uniform(next(k_iter), (1, 1), jnp.float32,
                           minval=-1.0 / dense_feature_dims ** 0.5,
                           maxval=1.0 / dense_feature_dims ** 0.5)

    emb_tables = [
        xavier_uniform(next(k_iter), (dim, embed_dim), dim, embed_dim)
        for dim in embed_nums
    ]
    disc_tables = [
        xavier_uniform(next(k_iter), (dim, 1), dim, 1)
        for dim in embed_nums
    ]
    return {
        "w_dense_T": w.T,            # (Dd, 1)
        "b_dense": b,                # (1, 1)
        "emb_tables": emb_tables,    # list of (dim_i, D)
        "disc_tables": disc_tables,  # list of (dim_i, 1)
        "embed_nums": embed_nums,
    }


def fm_forward(params, dense_x, discrete_x, *, block_b=512,
               embeds_dtype=jnp.float32):
    """Gather glue (XLA) + Pallas hot path. Set embeds_dtype=jnp.bfloat16 on
    v6e/v7x to halve HBM traffic of the dominant stream (kernel accumulates f32)."""
    F = len(params["embed_nums"])
    idx = discrete_x[:, :F]   # both discrete_layer and embeddings use first F fields

    # Build directly in batch-in-lanes layout.
    lin_t = jnp.stack(
        [params["disc_tables"][i][idx[:, i], 0] for i in range(F)], axis=0
    ).astype(embeds_dtype)                                   # (F, B)
    embeds_t = jnp.stack(
        [params["emb_tables"][i][idx[:, i], :].T for i in range(F)], axis=0
    ).astype(embeds_dtype)                                   # (F, D, B)

    return fm_forward_pallas(
        dense_x.T.astype(jnp.float32),
        params["w_dense_T"],
        params["b_dense"],
        lin_t,
        embeds_t,
        block_b=block_b,
    )


def fm_forward_ref(params, dense_x, discrete_x):
    """Pure-JAX reference mirroring the PyTorch forward."""
    F = len(params["embed_nums"])
    dense_out = dense_x @ params["w_dense_T"] + params["b_dense"][0, 0]
    lin_terms = jnp.stack(
        [params["disc_tables"][i][discrete_x[:, i], :] for i in range(F)], axis=1
    )
    discrete_out = jnp.sum(lin_terms, axis=1)                # (B, 1)
    embeds = jnp.stack(
        [params["emb_tables"][i][discrete_x[:, i], :] for i in range(F)], axis=1
    )
    sum_of_embeds = jnp.sum(embeds, axis=1)
    square_of_sum = jnp.square(sum_of_embeds)
    sum_of_square = jnp.sum(jnp.square(embeds), axis=1)
    second = jnp.sum(0.5 * (square_of_sum - sum_of_square), axis=1, keepdims=True)
    return dense_out + discrete_out + second


if __name__ == "__main__":
    # Small synthetic config consistent with the module's __init__.
    feature_dims = [10, 20, 30, 40, 50, 60]
    dense_feature_dims = 16
    embed_dim = 8
    interact_feature_nums = 2
    is_interact = False

    key = jax.random.PRNGKey(0)
    kp, kd, kx = jax.random.split(key, 3)

    params = build_fm_params(kp, feature_dims, dense_feature_dims, embed_dim,
                             interact_feature_nums, is_interact)

    def make_inputs(kd, kx, B):
        dense_x = jax.random.normal(kd, (B, dense_feature_dims), jnp.float32)
        cols = []
        for dim in feature_dims:
            kx, sub = jax.random.split(kx)
            cols.append(jax.random.randint(sub, (B,), 0, dim, jnp.int32))
        return dense_x, jnp.stack(cols, axis=1)

    # 1) Small batch (single grid step, padded lane tail).
    B = 8
    dense_x, discrete_x = make_inputs(kd, kx, B)
    out = jax.block_until_ready(fm_forward(params, dense_x, discrete_x))
    ref = fm_forward_ref(params, dense_x, discrete_x)
    assert out.shape == (B, 1), out.shape
    assert jnp.allclose(out, ref, atol=1e-5, rtol=1e-5), (out, ref)

    # 2) Larger batch exercising grid > 1 + ragged batch tail (B=300, TB=128).
    B2 = 300
    kd2, kx2 = jax.random.split(jax.random.PRNGKey(1))
    dense_x2, discrete_x2 = make_inputs(kd2, kx2, B2)
    out2 = jax.block_until_ready(
        fm_forward(params, dense_x2, discrete_x2, block_b=128))
    ref2 = fm_forward_ref(params, dense_x2, discrete_x2)
    assert out2.shape == (B2, 1), out2.shape
    assert jnp.allclose(out2, ref2, atol=1e-5, rtol=1e-5)

    print("KERNEL_OK")
</pallas_src>

<mosaic_0001>
module attributes {stable_mosaic.version = 11 : i64} {
  func.func @fm_kernel(%arg0: i32, %arg1: memref<16x128xf32, #tpu.memory_space<vmem>>, %arg2: memref<16x1xf32, #tpu.memory_space<vmem>>, %arg3: memref<1x1xf32, #tpu.memory_space<smem>>, %arg4: memref<4x128xf32, #tpu.memory_space<vmem>>, %arg5: memref<4x8x128xf32, #tpu.memory_space<vmem>>, %arg6: memref<1x128xf32, #tpu.memory_space<vmem>>) attributes {dimension_semantics = [#tpu.dimension_semantics<parallel>], iteration_bounds = array<i64: 1>, scalar_prefetch = 0 : i64, scratch_operands = 0 : i64, tpu.core_type = #tpu.core_type<tc>, window_params = [{transform_indices = @transform_0, window_bounds = array<i64: 16, 128>}, {pipeline_mode = #tpu.pipeline_mode<synchronous>, transform_indices = @transform_1, window_bounds = array<i64: 16, 1>}, {transform_indices = @transform_2, window_bounds = array<i64: 1, 1>}, {transform_indices = @transform_3, window_bounds = array<i64: 4, 128>}, {transform_indices = @transform_4, window_bounds = array<i64: 4, 8, 128>}, {transform_indices = @transform_5, window_bounds = array<i64: 1, 128>}]} {
    %c0 = arith.constant 0 : index
    %c0_0 = arith.constant 0 : index
    %0 = vector.load %arg1[%c0, %c0_0] : memref<16x128xf32, #tpu.memory_space<vmem>>, vector<16x128xf32>
    %c0_1 = arith.constant 0 : index
    %c0_2 = arith.constant 0 : index
    %1 = vector.load %arg2[%c0_1, %c0_2] : memref<16x1xf32, #tpu.memory_space<vmem>>, vector<16x1xf32>
    %2 = vector.broadcast %1 : vector<16x1xf32> to vector<16x128xf32>
    %3 = arith.mulf %0, %2 : vector<16x128xf32>
    %cst = arith.constant dense<0.000000e+00> : vector<128xf32>
    %4 = vector.multi_reduction <add>, %3, %cst [0] : vector<16x128xf32> to vector<128xf32>
    %5 = vector.shape_cast %4 : vector<128xf32> to vector<1x128xf32>
    %c0_3 = arith.constant 0 : index
    %c0_4 = arith.constant 0 : index
    %6 = vector.load %arg4[%c0_3, %c0_4] : memref<4x128xf32, #tpu.memory_space<vmem>>, vector<4x128xf32>
    %cst_5 = arith.constant dense<0.000000e+00> : vector<128xf32>
    %7 = vector.multi_reduction <add>, %6, %cst_5 [0] : vector<4x128xf32> to vector<128xf32>
    %8 = vector.shape_cast %7 : vector<128xf32> to vector<1x128xf32>
    %c0_6 = arith.constant 0 : index
    %c0_7 = arith.constant 0 : index
    %c0_8 = arith.constant 0 : index
    %9 = vector.load %arg5[%c0_6, %c0_7, %c0_8] : memref<4x8x128xf32, #tpu.memory_space<vmem>>, vector<4x8x128xf32>
    %cst_9 = arith.constant dense<0.000000e+00> : vector<8x128xf32>
    %10 = vector.multi_reduction <add>, %9, %cst_9 [0] : vector<4x8x128xf32> to vector<8x128xf32>
    %11 = arith.mulf %10, %10 : vector<8x128xf32>
    %12 = arith.mulf %9, %9 : vector<4x8x128xf32>
    %cst_10 = arith.constant dense<0.000000e+00> : vector<8x128xf32>
    %13 = vector.multi_reduction <add>, %12, %cst_10 [0] : vector<4x8x128xf32> to vector<8x128xf32>
    %14 = arith.subf %11, %13 : vector<8x128xf32>
    %cst_11 = arith.constant dense<0.000000e+00> : vector<128xf32>
    %15 = vector.multi_reduction <add>, %14, %cst_11 [0] : vector<8x128xf32> to vector<128xf32>
    %16 = vector.shape_cast %15 : vector<128xf32> to vector<1x128xf32>
    %cst_12 = arith.constant 5.000000e-01 : f32
    %17 = vector.broadcast %cst_12 : f32 to vector<1x128xf32>
    %18 = arith.mulf %17, %16 : vector<1x128xf32>
    %19 = arith.addf %5, %8 : vector<1x128xf32>
    %20 = arith.addf %19, %18 : vector<1x128xf32>
    %c0_13 = arith.constant 0 : index
    %c0_14 = arith.constant 0 : index
    %21 = memref.load %arg3[%c0_13, %c0_14] : memref<1x1xf32, #tpu.memory_space<smem>>
    %22 = vector.broadcast %21 : f32 to vector<1x128xf32>
    %23 = arith.addf %20, %22 : vector<1x128xf32>
    %c0_15 = arith.constant 0 : index
    %c0_16 = arith.constant 0 : index
    %24 = vector.load %arg6[%c0_15, %c0_16] : memref<1x128xf32, #tpu.memory_space<vmem>>, vector<1x128xf32>
    tpu.vector_store %arg6[%c0_15, %c0_16], %23 {strides = array<i32>} : memref<1x128xf32, #tpu.memory_space<vmem>>, vector<1x128xf32>,
    return
  }
  func.func @transform_0(%arg0: i32) -> (i32, i32) {
    %c0_i32 = arith.constant 0 : i32
    %c0_i32_0 = arith.constant 0 : i32
    return %c0_i32, %arg0 : i32, i32
  }
  func.func @transform_1(%arg0: i32) -> (i32, i32) {
    %c0_i32 = arith.constant 0 : i32
    %c0_i32_0 = arith.constant 0 : i32
    %c0_i32_1 = arith.constant 0 : i32
    return %c0_i32, %c0_i32_0 : i32, i32
  }
  func.func @transform_2(%arg0: i32) -> (i32, i32) {
    %c0_i32 = arith.constant 0 : i32
    %c0_i32_0 = arith.constant 0 : i32
    %c0_i32_1 = arith.constant 0 : i32
    return %c0_i32, %c0_i32_0 : i32, i32
  }
  func.func @transform_3(%arg0: i32) -> (i32, i32) {
    %c0_i32 = arith.constant 0 : i32
    %c0_i32_0 = arith.constant 0 : i32
    return %c0_i32, %arg0 : i32, i32
  }
  func.func @transform_4(%arg0: i32) -> (i32, i32, i32) {
    %c0_i32 = arith.constant 0 : i32
    %c0_i32_0 = arith.constant 0 : i32
    %c0_i32_1 = arith.constant 0 : i32
    return %c0_i32, %c0_i32_0, %arg0 : i32, i32, i32
  }
  func.func @transform_5(%arg0: i32) -> (i32, i32) {
    %c0_i32 = arith.constant 0 : i32
    %c0_i32_0 = arith.constant 0 : i32
    return %c0_i32, %arg0 : i32, i32
  }
}

</mosaic_0001>

<bundles_post_ra>
// kernel: tpu_custom_call.1
= control target key start
LH: loop header
LB: loop body
LE: loop exit
PB: predicated region body
PF: predicated region fallthrough
CT: control target
= control target key end

     0   :  { %11 = vsyncpa [#allocation4], 0  ;;  %s297_s0 = inlined_call_operand.hbm [shape: f32[16,128], index: 0, kind: input, shape index: {}]   ;;  %s298_s1 = inlined_call_operand.vmem [shape: f32[16,1], index: 1, kind: input, shape index: {}]   ;;  %s299_s2 = inlined_call_operand.<no memory space> [shape: f32[1,1], index: 2, kind: input, shape index: {}]   ;;  %s300_s3 = inlined_call_operand.hbm [shape: f32[4,128], index: 3, kind: input, shape index: {}]   ;;  %s301_s4 = inlined_call_operand.vmem [shape: f32[4,8,128], index: 4, kind: input, shape index: {}]   ;;  %s302_s5 = inlined_call_operand.hbm [shape: f32[1,128], index: 5, kind: output, shape index: {}]  }
   0x1   :  { %12 = vsyncpa [#allocation7], 0 }
   0x2   :  { %13 = vsyncpa [#allocation5], 0  ;;  %s204_s18 = smov [#allocation3]   ;;  %s132_s22 = scalar_lea.hbm %s297_s0, 256 }
   0x3   :  { %s19_s19 = sshll.u32 %s204_s18, 4  ;;  %p133_p0 = scmp.ne.s32.totalorder %s297_s0, %s132_s22  ;;  %s20_s19 = int_to_ptr.vmem [resolvable:$true] %s19_s19 }
   0x4   :  { %p136_p1 = scmp.lt.u32.totalorder %s132_s22, %s297_s0 }
   0x6   :  { %p138_p2 = pnand %p136_p1, %p133_p0 }
   0x8   :  { %141 = shalt.err (!%p138_p2)
}
   0x9   :  { %s142_s27 = scalar_lea.vmem %s20_s19, 256  ;;  %p147_p4 = scmp.lt.s32.totalorder %s20_s19, %s20_s19 }
   0xa   :  { %p143_p3 = scmp.ne.s32.totalorder %s20_s19, %s142_s27  ;;  %p148_p5 = scmp.lt.s32.totalorder %s142_s27, %s142_s27 }
   0xc   :  { %p149_p6 = por %p148_p5, %p147_p4 }
   0xe   :  { %p150_p7 = pnand %p149_p6, %p143_p3 }
  0x10   :  { %153 = shalt.err (!%p150_p7)
}
  0x11   :  { %s205_s28 = smov 128   ;;  %s206_s29 = smov 8  }
  0x12   :  { %25 = dma.hbm_to_vmem [thread:$0]  %s297_s0, 256, %s20_s19, [#allocation4], %s205_s28, %s205_s28, %s206_s29  }
  0x13   :  { %s207_s7 = smov [#allocation6]   ;;  %s154_s11 = scalar_lea.hbm %s300_s3, 64 }
  0x14   :  { %s36_s8 = sshll.u32 %s207_s7, 4  ;;  %p155_p8 = scmp.ne.s32.totalorder %s300_s3, %s154_s11  ;;  %s37_s8 = int_to_ptr.vmem [resolvable:$true] %s36_s8 }
  0x15   :  { %p158_p9 = scmp.lt.u32.totalorder %s154_s11, %s300_s3 }
  0x17   :  { %p160_p10 = pnand %p158_p9, %p155_p8 }
  0x19   :  { %163 = shalt.err (!%p160_p10)
}
  0x1a   :  { %s164_s16 = scalar_lea.vmem %s37_s8, 64  ;;  %p169_p12 = scmp.lt.s32.totalorder %s37_s8, %s37_s8 }
  0x1b   :  { %p165_p11 = scmp.ne.s32.totalorder %s37_s8, %s164_s16  ;;  %p170_p13 = scmp.lt.s32.totalorder %s164_s16, %s164_s16 }
  0x1d   :  { %p171_p0 = por %p170_p13, %p169_p12 }
  0x1f   :  { %p172_p1 = pnand %p171_p0, %p165_p11 }
  0x21   :  { %175 = shalt.err (!%p172_p1)
}
  0x22   :  { %39 = dma.hbm_to_vmem [thread:$0]  %s300_s3, 64, %s37_s8, [#allocation7]  }
  0x23   :  { %198 = dma.done.wait [#allocation4], 256  }
  0x24   :  { %199 = vsyncadd [#allocation4], 4294967040 }
  0x25   :  { %200 = dma.done.wait [#allocation7], 64  }
  0x26   :  { %201 = vsyncadd [#allocation7], 4294967232  ;;  %v208_v0 = vmov 0   ;;  %v50_v1 = vld [vmem:[%s298_s1] sm:$0xff]  ;;  %v51_v2 = vld [vmem:[%s298_s1 + $0x8] sm:$0xff]  ;;  %vm72_vm0 = vcmask 1043456   ;;  %v106_v48 = vstv %s299_s2 }
  0x27   :  { %131 = vset.pattern.permute.xlu0 %v208_v0  ;;  %v80_v3 = vld [vmem:[%s301_s4] sm:$0xff]  ;;  %v81_v4 = vld [vmem:[%s301_s4 + $0x8] sm:$0xff]  ;;  %v82_v8 = vld [vmem:[%s301_s4 + $0x10] sm:$0xff]  ;;  %s209_s29 = smov [#allocation8]  }
  0x28   :  { %54 = vperm.xlu0 %131, %v50_v1   ;;  %v84_v5 = vadd.f32 %v81_v4, %v80_v3  ;;  %v88_v6 = vmul.f32 %v80_v3, %v80_v3  ;;  %v89_v7 = vmul.f32 %v81_v4, %v81_v4  ;;  %v90_v10 = vmul.f32 %v82_v8, %v82_v8  ;;  %v83_v12 = vld [vmem:[%s301_s4 + $0x18] sm:$0xff]  ;;  %v71_v18 = vld [vmem:[#allocation6] sm:$0xf]  ;;  %v48_v26 = vld [vmem:[#allocation3] sm:$0xff]  ;;  %s115_s30 = sshll.u32 %s209_s29, 4  ;;  %s116_s30 = int_to_ptr.vmem [resolvable:$true] %s115_s30 }
  0x29   :  { %v91_v14 = vmul.f32 %v83_v12, %v83_v12  ;;  %v73_v20 = vsel %vm72_vm0, %v71_v18, 0.0  ;;  %v49_v27 = vld [vmem:[#allocation3 + $0x8] sm:$0xff]  ;;  %s176_s6 = scalar_lea.vmem %s116_s30, 16  ;;  %s180_s7 = scalar_lea.vmem %s116_s30, 32 }
  0x2a   :  { %v85_v9 = vadd.f32 %v84_v5, %v82_v8  ;;  %v92_v11 = vadd.f32 %v89_v7, %v88_v6  ;;  %v74_v22 = vrot.slane %v73_v20, 4  ;;  %p177_p2 = scmp.ne.s32.totalorder %s116_s30, %s176_s6  ;;  %p181_p3 = scmp.lt.s32.totalorder %s116_s30, %s116_s30 }
  0x2b   :  { %p182_p4 = scmp.lt.s32.totalorder %s180_s7, %s176_s6 }
  0x2c   :  { %59 = vperm.xlu0 %131, %v51_v2   ;;  %v86_v13 = vadd.f32 %v85_v9, %v83_v12  ;;  %v93_v15 = vadd.f32 %v92_v11, %v90_v10  ;;  %v75_v25 = vadd.f32 %v74_v22, %v73_v20 }
  0x2d   :  { %p183_p5 = por %p182_p4, %p181_p3 }
  0x2e   :  { %v87_v16 = vmul.f32 %v86_v13, %v86_v13  ;;  %v94_v17 = vadd.f32 %v93_v15, %v91_v14  ;;  %v76_v32 = vrot.slane %v75_v25, 2 }
  0x2f   :  { %p184_p6 = pnand %p183_p5, %p177_p2 }
  0x30   :  { %v95_v19 = vsub.f32 %v87_v16, %v94_v17  ;;  %v77_v36 = vadd.f32 %v76_v32, %v75_v25 }
  0x32   :  { %v96_v21 = vrot.slane %v95_v19, 4  ;;  %v78_v40 = vrot.slane %v77_v36, 1 }
  0x34   :  { %v97_v23 = vadd.f32 %v96_v21, %v95_v19  ;;  %v79_v44 = vadd.f32 %v78_v40, %v77_v36 }
  0x36   :  { %v98_v28 = vrot.slane %v97_v23, 2 }
  0x38   :  { %v99_v34 = vadd.f32 %v98_v28, %v97_v23 }
  0x3a   :  { %v100_v38 = vrot.slane %v99_v34, 1 }
  0x3c   :  { %v101_v42 = vadd.f32 %v100_v38, %v99_v34 }
  0x3e   :  { %v102_v46 = vmul.f32 0.5, %v101_v42 }
  0xa7   :  { %v55_v24 = vpop.permute.xlu0 %54 }
  0xa8   :  { %v62_v30 = vmul.f32 %v55_v24, %v48_v26 }
  0xab   :  { %v60_v29 = vpop.permute.xlu0 %59 }
  0xac   :  { %v63_v31 = vmul.f32 %v60_v29, %v49_v27 }
  0xae   :  { %v64_v33 = vadd.f32 %v63_v31, %v62_v30 }
  0xb0   :  { %v65_v35 = vrot.slane %v64_v33, 4 }
  0xb2   :  { %v66_v37 = vadd.f32 %v65_v35, %v64_v33 }
  0xb4   :  { %v67_v39 = vrot.slane %v66_v37, 2 }
  0xb6   :  { %v68_v41 = vadd.f32 %v67_v39, %v66_v37 }
  0xb8   :  { %v69_v43 = vrot.slane %v68_v41, 1 }
  0xba   :  { %v70_v45 = vadd.f32 %v69_v43, %v68_v41 }
  0xbc   :  { %v103_v47 = vadd.f32 %v79_v44, %v70_v45 }
  0xbe   :  { %v104_v49 = vadd.f32 %v103_v47, %v102_v46 }
  0xc0   :  { %v107_v50 = vadd.f32 %v106_v48, %v104_v49 }
  0xc2   :  { %108 = vst [vmem:[#allocation8] sm:$0x1] %v107_v50 }
  0xc3   :  { %187 = shalt.err (!%p184_p6)
}
  0xc4   :  { %s188_s10 = scalar_lea.hbm %s302_s5, 16 }
  0xc5   :  { %p189_p7 = scmp.ne.s32.totalorder %s302_s5, %s188_s10  ;;  %p192_p8 = scmp.lt.u32.totalorder %s188_s10, %s302_s5 }
  0xc7   :  { %p194_p9 = pnand %p192_p8, %p189_p7 }
  0xc9   :  { %197 = shalt.err (!%p194_p9)
}
  0xca   :  { %118 = dma.vmem_to_hbm [thread:$0]  %s116_s30, 16, %s302_s5, [#allocation5]  }
  0xcb   :  { %202 = dma.done.wait [#allocation5], 16  }
  0xcc   :  { %203 = vsyncadd [#allocation5], 4294967280 }
  0xcd   :  { %122 = vsyncpa [#allocation4], 1 }
  0xce   :  { %123 = vsyncpa [#allocation7], 1 }
  0xcf   :  { %124 = vsyncpa [#allocation5], 1 }

</bundles_post_ra>
